<compile_context>
chip_gen: v7x
topology: tpu7x:2x2x1
jax: 0.10.0
libtpu: 0.0.40
codegen_flags: <defaults>
</compile_context>

<pallas_src>
import functools

import jax
import jax.numpy as jnp
from jax.experimental import pallas as pl
from jax.experimental.pallas import tpu as pltpu


def _elu_ref(x):
    # nn.ELU (alpha=1.0), reference form.
    return jnp.where(x > 0, x, jnp.expm1(x))


def _elu_kernel(x):
    # In-kernel ELU: exp(x)-1 on the negative branch (guaranteed Mosaic
    # lowering; |diff| vs expm1 is < 1e-7 at f32 over the ELU range).
    return jnp.where(x > 0, x, jnp.exp(x) - 1.0)


def lstm_decoder_kernel(
    h_ref,        # (B, H)    encoder hidden state (also the constant cell input)
    c_ref,        # (B, H)    encoder cell state
    w_init_h_ref,  # (2H, L)  init_h weight (pre-transposed)
    b_init_h_ref,  # (1, L)
    w_init_c_ref,  # (2H, L)  init_c weight (pre-transposed)
    b_init_c_ref,  # (1, L)
    w_ih_ref,      # (H, 4L)  LSTM input->gates weight (pre-transposed)
    b_ih_ref,      # (1, 4L)
    w_hh_ref,      # (L, 4L)  LSTM hidden->gates weight (pre-transposed)
    b_hh_ref,      # (1, 4L)
    out_ref,       # (B, seq_len*L) lane-dense output slab
    *,
    seq_len,
):
    H = h_ref.shape[1]
    L = w_hh_ref.shape[0]

    h_in = h_ref[...]
    c_in = c_ref[...]

    # ---- one-time state init, fused into the kernel ----------------------
    # cat(h, c) @ W == h @ W[:H] + c @ W[H:]  (avoids an in-kernel concat of
    # the activations; the weight slices are sublane-aligned, one-time).
    w_init_h = w_init_h_ref[...]
    w_init_c = w_init_c_ref[...]
    h_t = _elu_kernel(
        jnp.dot(h_in, w_init_h[:H, :], preferred_element_type=jnp.float32)
        + jnp.dot(c_in, w_init_h[H:, :], preferred_element_type=jnp.float32)
        + b_init_h_ref[...]
    )
    c_t = _elu_kernel(
        jnp.dot(h_in, w_init_c[:H, :], preferred_element_type=jnp.float32)
        + jnp.dot(c_in, w_init_c[H:, :], preferred_element_type=jnp.float32)
        + b_init_c_ref[...]
    )

    # Constant per-step input projection; both biases folded in once.
    gates_bias = (
        jnp.dot(h_in, w_ih_ref[...], preferred_element_type=jnp.float32)
        + b_ih_ref[...]
        + b_hh_ref[...]
    )

    # Recurrent weight as a bf16 MXU operand (native on v6e/v7x, harmless on
    # v5e); f32 accumulation, all gate/elementwise math stays f32.
    w_hh = w_hh_ref[...].astype(jnp.bfloat16)

    # ---- statically unrolled recurrence; h_t/c_t stay in vregs ------------
    outs = []
    for _ in range(seq_len):
        gates = gates_bias + jnp.dot(
            h_t.astype(jnp.bfloat16), w_hh, preferred_element_type=jnp.float32
        )
        # Two full-(B,4L) activation passes, then slices (optimal while 4L
        # fits a single vreg lane-wise).
        sig = jax.nn.sigmoid(gates)
        tnh = jnp.tanh(gates)
        i_g = sig[:, 0 * L:1 * L]
        f_g = sig[:, 1 * L:2 * L]
        g_g = tnh[:, 2 * L:3 * L]
        o_g = sig[:, 3 * L:4 * L]

        c_t = f_g * c_t + i_g * g_g
        h_t = o_g * jnp.tanh(c_t)
        outs.append(h_t)

    # Single lane-dense, unmasked store of the whole output slab
    # (replaces seq_len masked 32-lane stores inside the recurrence).
    out_ref[...] = jnp.concatenate(outs, axis=1)


@functools.partial(jax.jit, static_argnames=("seq_len",))
def lstm_decoder_forward(h, c, seq_len, params):
    B, H = h.shape
    L = params["w_hh"].shape[0]

    kernel = functools.partial(lstm_decoder_kernel, seq_len=seq_len)

    def spec(shape):
        return pl.BlockSpec(shape, lambda i: (0, 0))

    out = pl.pallas_call(
        kernel,
        out_shape=jax.ShapeDtypeStruct((B, seq_len * L), jnp.float32),
        grid=(1,),
        in_specs=[
            spec((B, H)),            # h
            spec((B, H)),            # c
            spec((2 * H, L)),        # w_init_h
            spec((1, L)),            # b_init_h
            spec((2 * H, L)),        # w_init_c
            spec((1, L)),            # b_init_c
            spec((H, 4 * L)),        # w_ih
            spec((1, 4 * L)),        # b_ih
            spec((L, 4 * L)),        # w_hh
            spec((1, 4 * L)),        # b_hh
        ],
        out_specs=spec((B, seq_len * L)),
        compiler_params=pltpu.CompilerParams(
            dimension_semantics=("arbitrary",),
        ),
    )(
        h, c,
        params["w_init_h"], params["b_init_h"],
        params["w_init_c"], params["b_init_c"],
        params["w_ih"], params["b_ih"],
        params["w_hh"], params["b_hh"],
    )

    # Lane-dense (B, seq_len*L) -> (B, seq_len, L): free contiguous reshape,
    # matching torch.stack(output, dim=1).
    return out.reshape(B, seq_len, L)


def make_params(key, hidden_size, latent_space):
    """Deterministic synthetic parameters (weights stored pre-transposed)."""
    ks = jax.random.split(key, 8)
    H, L = hidden_size, latent_space
    s = 0.1
    return {
        "w_init_h": s * jax.random.normal(ks[0], (2 * H, L), jnp.float32),
        "b_init_h": s * jax.random.normal(ks[1], (1, L), jnp.float32),
        "w_init_c": s * jax.random.normal(ks[2], (2 * H, L), jnp.float32),
        "b_init_c": s * jax.random.normal(ks[3], (1, L), jnp.float32),
        "w_ih": s * jax.random.normal(ks[4], (H, 4 * L), jnp.float32),
        "b_ih": s * jax.random.normal(ks[5], (1, 4 * L), jnp.float32),
        "w_hh": s * jax.random.normal(ks[6], (L, 4 * L), jnp.float32),
        "b_hh": s * jax.random.normal(ks[7], (1, 4 * L), jnp.float32),
    }


def reference_forward(h, c, seq_len, params):
    """Pure-JAX f32 reference mirroring the PyTorch module semantics."""
    L = params["w_hh"].shape[0]
    hc = jnp.concatenate([h, c], axis=1)
    h_t = _elu_ref(hc @ params["w_init_h"] + params["b_init_h"])
    c_t = _elu_ref(hc @ params["w_init_c"] + params["b_init_c"])
    x_proj = h @ params["w_ih"] + params["b_ih"]
    outs = []
    for _ in range(seq_len):
        gates = x_proj + h_t @ params["w_hh"] + params["b_hh"]
        i_g = jax.nn.sigmoid(gates[:, 0 * L:1 * L])
        f_g = jax.nn.sigmoid(gates[:, 1 * L:2 * L])
        g_g = jnp.tanh(gates[:, 2 * L:3 * L])
        o_g = jax.nn.sigmoid(gates[:, 3 * L:4 * L])
        c_t = f_g * c_t + i_g * g_g
        h_t = o_g * jnp.tanh(c_t)
        outs.append(h_t)
    return jnp.stack(outs, axis=1)


if __name__ == "__main__":
    B, hidden_size, latent_space, seq_len = 4, 32, 32, 8

    key = jax.random.PRNGKey(0)
    k_h, k_c, k_p = jax.random.split(key, 3)
    h = jax.random.normal(k_h, (B, hidden_size), jnp.float32)
    c = jax.random.normal(k_c, (B, hidden_size), jnp.float32)
    params = make_params(k_p, hidden_size, latent_space)

    out = lstm_decoder_forward(h, c, seq_len, params)
    out = jax.block_until_ready(out)

    ref = reference_forward(h, c, seq_len, params)
    assert out.shape == (B, seq_len, latent_space)
    # Tolerance loosened vs. the f32 reference because the recurrent dot uses
    # bf16 MXU operands (f32 accumulate) inside the kernel.
    assert jnp.allclose(out, ref, atol=1e-2, rtol=1e-2), float(
        jnp.max(jnp.abs(out - ref))
    )

    print("KERNEL_OK")
</pallas_src>

<mosaic_0001>
module attributes {stable_mosaic.version = 11 : i64} {
  func.func @lstm_decoder_kernel(%arg0: i32, %arg1: memref<4x32xf32, #tpu.memory_space<vmem>>, %arg2: memref<4x32xf32, #tpu.memory_space<vmem>>, %arg3: memref<64x32xf32, #tpu.memory_space<vmem>>, %arg4: memref<1x32xf32, #tpu.memory_space<vmem>>, %arg5: memref<64x32xf32, #tpu.memory_space<vmem>>, %arg6: memref<1x32xf32, #tpu.memory_space<vmem>>, %arg7: memref<32x128xf32, #tpu.memory_space<vmem>>, %arg8: memref<1x128xf32, #tpu.memory_space<vmem>>, %arg9: memref<32x128xf32, #tpu.memory_space<vmem>>, %arg10: memref<1x128xf32, #tpu.memory_space<vmem>>, %arg11: memref<4x256xf32, #tpu.memory_space<vmem>>) attributes {dimension_semantics = [#tpu.dimension_semantics<arbitrary>], iteration_bounds = array<i64: 1>, scalar_prefetch = 0 : i64, scratch_operands = 0 : i64, tpu.core_type = #tpu.core_type<tc>, window_params = [{pipeline_mode = #tpu.pipeline_mode<synchronous>, transform_indices = @transform_0, window_bounds = array<i64: 4, 32>}, {pipeline_mode = #tpu.pipeline_mode<synchronous>, transform_indices = @transform_1, window_bounds = array<i64: 4, 32>}, {pipeline_mode = #tpu.pipeline_mode<synchronous>, transform_indices = @transform_2, window_bounds = array<i64: 64, 32>}, {pipeline_mode = #tpu.pipeline_mode<synchronous>, transform_indices = @transform_3, window_bounds = array<i64: 1, 32>}, {pipeline_mode = #tpu.pipeline_mode<synchronous>, transform_indices = @transform_4, window_bounds = array<i64: 64, 32>}, {pipeline_mode = #tpu.pipeline_mode<synchronous>, transform_indices = @transform_5, window_bounds = array<i64: 1, 32>}, {pipeline_mode = #tpu.pipeline_mode<synchronous>, transform_indices = @transform_6, window_bounds = array<i64: 32, 128>}, {pipeline_mode = #tpu.pipeline_mode<synchronous>, transform_indices = @transform_7, window_bounds = array<i64: 1, 128>}, {pipeline_mode = #tpu.pipeline_mode<synchronous>, transform_indices = @transform_8, window_bounds = array<i64: 32, 128>}, {pipeline_mode = #tpu.pipeline_mode<synchronous>, transform_indices = @transform_9, window_bounds = array<i64: 1, 128>}, {pipeline_mode = #tpu.pipeline_mode<synchronous>, transform_indices = @transform_10, window_bounds = array<i64: 4, 256>}]} {
    %c0 = arith.constant 0 : index
    %c0_0 = arith.constant 0 : index
    %0 = vector.load %arg1[%c0, %c0_0] : memref<4x32xf32, #tpu.memory_space<vmem>>, vector<4x32xf32>
    %c0_1 = arith.constant 0 : index
    %c0_2 = arith.constant 0 : index
    %1 = vector.load %arg2[%c0_1, %c0_2] : memref<4x32xf32, #tpu.memory_space<vmem>>, vector<4x32xf32>
    %c0_3 = arith.constant 0 : index
    %c0_4 = arith.constant 0 : index
    %2 = vector.load %arg3[%c0_3, %c0_4] : memref<64x32xf32, #tpu.memory_space<vmem>>, vector<64x32xf32>
    %c0_5 = arith.constant 0 : index
    %c0_6 = arith.constant 0 : index
    %3 = vector.load %arg5[%c0_5, %c0_6] : memref<64x32xf32, #tpu.memory_space<vmem>>, vector<64x32xf32>
    %4 = vector.extract_strided_slice %2 {offsets = [0, 0], sizes = [32, 32], strides = [1, 1]} : vector<64x32xf32> to vector<32x32xf32>
    %cst = arith.constant dense<0.000000e+00> : vector<4x32xf32>
    %5 = tpu.matmul %0, %4, %cst {dimension_numbers = #tpu.dot_dimension_numbers<[1], [0], [0], [1], [0, 0, 1, 1], [], []>} : vector<4x32xf32>, vector<32x32xf32>, vector<4x32xf32> -> vector<4x32xf32>
    %6 = vector.extract_strided_slice %2 {offsets = [32, 0], sizes = [32, 32], strides = [1, 1]} : vector<64x32xf32> to vector<32x32xf32>
    %cst_7 = arith.constant dense<0.000000e+00> : vector<4x32xf32>
    %7 = tpu.matmul %1, %6, %cst_7 {dimension_numbers = #tpu.dot_dimension_numbers<[1], [0], [0], [1], [0, 0, 1, 1], [], []>} : vector<4x32xf32>, vector<32x32xf32>, vector<4x32xf32> -> vector<4x32xf32>
    %8 = arith.addf %5, %7 : vector<4x32xf32>
    %c0_8 = arith.constant 0 : index
    %c0_9 = arith.constant 0 : index
    %9 = vector.load %arg4[%c0_8, %c0_9] : memref<1x32xf32, #tpu.memory_space<vmem>>, vector<1x32xf32>
    %10 = vector.broadcast %9 : vector<1x32xf32> to vector<4x32xf32>
    %11 = arith.addf %8, %10 : vector<4x32xf32>
    %cst_10 = arith.constant 0.000000e+00 : f32
    %12 = vector.broadcast %cst_10 : f32 to vector<4x32xf32>
    %13 = arith.cmpf ogt, %11, %12 : vector<4x32xf32>
    %14 = math.exp %11 : vector<4x32xf32>
    %cst_11 = arith.constant 1.000000e+00 : f32
    %15 = vector.broadcast %cst_11 : f32 to vector<4x32xf32>
    %16 = arith.subf %14, %15 : vector<4x32xf32>
    %17 = arith.select %13, %11, %16 : vector<4x32xi1>, vector<4x32xf32>
    %18 = vector.extract_strided_slice %3 {offsets = [0, 0], sizes = [32, 32], strides = [1, 1]} : vector<64x32xf32> to vector<32x32xf32>
    %cst_12 = arith.constant dense<0.000000e+00> : vector<4x32xf32>
    %19 = tpu.matmul %0, %18, %cst_12 {dimension_numbers = #tpu.dot_dimension_numbers<[1], [0], [0], [1], [0, 0, 1, 1], [], []>} : vector<4x32xf32>, vector<32x32xf32>, vector<4x32xf32> -> vector<4x32xf32>
    %20 = vector.extract_strided_slice %3 {offsets = [32, 0], sizes = [32, 32], strides = [1, 1]} : vector<64x32xf32> to vector<32x32xf32>
    %cst_13 = arith.constant dense<0.000000e+00> : vector<4x32xf32>
    %21 = tpu.matmul %1, %20, %cst_13 {dimension_numbers = #tpu.dot_dimension_numbers<[1], [0], [0], [1], [0, 0, 1, 1], [], []>} : vector<4x32xf32>, vector<32x32xf32>, vector<4x32xf32> -> vector<4x32xf32>
    %22 = arith.addf %19, %21 : vector<4x32xf32>
    %c0_14 = arith.constant 0 : index
    %c0_15 = arith.constant 0 : index
    %23 = vector.load %arg6[%c0_14, %c0_15] : memref<1x32xf32, #tpu.memory_space<vmem>>, vector<1x32xf32>
    %24 = vector.broadcast %23 : vector<1x32xf32> to vector<4x32xf32>
    %25 = arith.addf %22, %24 : vector<4x32xf32>
    %cst_16 = arith.constant 0.000000e+00 : f32
    %26 = vector.broadcast %cst_16 : f32 to vector<4x32xf32>
    %27 = arith.cmpf ogt, %25, %26 : vector<4x32xf32>
    %28 = math.exp %25 : vector<4x32xf32>
    %cst_17 = arith.constant 1.000000e+00 : f32
    %29 = vector.broadcast %cst_17 : f32 to vector<4x32xf32>
    %30 = arith.subf %28, %29 : vector<4x32xf32>
    %31 = arith.select %27, %25, %30 : vector<4x32xi1>, vector<4x32xf32>
    %c0_18 = arith.constant 0 : index
    %c0_19 = arith.constant 0 : index
    %32 = vector.load %arg7[%c0_18, %c0_19] : memref<32x128xf32, #tpu.memory_space<vmem>>, vector<32x128xf32>
    %cst_20 = arith.constant dense<0.000000e+00> : vector<4x128xf32>
    %33 = tpu.matmul %0, %32, %cst_20 {dimension_numbers = #tpu.dot_dimension_numbers<[1], [0], [0], [1], [0, 0, 1, 1], [], []>} : vector<4x32xf32>, vector<32x128xf32>, vector<4x128xf32> -> vector<4x128xf32>
    %c0_21 = arith.constant 0 : index
    %c0_22 = arith.constant 0 : index
    %34 = vector.load %arg8[%c0_21, %c0_22] : memref<1x128xf32, #tpu.memory_space<vmem>>, vector<1x128xf32>
    %35 = vector.broadcast %34 : vector<1x128xf32> to vector<4x128xf32>
    %36 = arith.addf %33, %35 : vector<4x128xf32>
    %c0_23 = arith.constant 0 : index
    %c0_24 = arith.constant 0 : index
    %37 = vector.load %arg10[%c0_23, %c0_24] : memref<1x128xf32, #tpu.memory_space<vmem>>, vector<1x128xf32>
    %38 = vector.broadcast %37 : vector<1x128xf32> to vector<4x128xf32>
    %39 = arith.addf %36, %38 : vector<4x128xf32>
    %c0_25 = arith.constant 0 : index
    %c0_26 = arith.constant 0 : index
    %40 = vector.load %arg9[%c0_25, %c0_26] : memref<32x128xf32, #tpu.memory_space<vmem>>, vector<32x128xf32>
    %41 = arith.truncf %40 : vector<32x128xf32> to vector<32x128xbf16>
    %42 = arith.truncf %17 : vector<4x32xf32> to vector<4x32xbf16>
    %cst_27 = arith.constant dense<0.000000e+00> : vector<4x128xf32>
    %43 = tpu.matmul %42, %41, %cst_27 {dimension_numbers = #tpu.dot_dimension_numbers<[1], [0], [0], [1], [0, 0, 1, 1], [], []>} : vector<4x32xbf16>, vector<32x128xbf16>, vector<4x128xf32> -> vector<4x128xf32>
    %44 = arith.addf %39, %43 : vector<4x128xf32>
    %45 = arith.negf %44 : vector<4x128xf32>
    %46 = math.exp %45 : vector<4x128xf32>
    %cst_28 = arith.constant 1.000000e+00 : f32
    %47 = vector.broadcast %cst_28 : f32 to vector<4x128xf32>
    %48 = arith.addf %47, %46 : vector<4x128xf32>
    %49 = arith.divf %47, %48 : vector<4x128xf32>
    %50 = math.tanh %44 : vector<4x128xf32>
    %51 = vector.extract_strided_slice %49 {offsets = [0, 0], sizes = [4, 32], strides = [1, 1]} : vector<4x128xf32> to vector<4x32xf32>
    %52 = vector.extract_strided_slice %49 {offsets = [0, 32], sizes = [4, 32], strides = [1, 1]} : vector<4x128xf32> to vector<4x32xf32>
    %53 = vector.extract_strided_slice %50 {offsets = [0, 64], sizes = [4, 32], strides = [1, 1]} : vector<4x128xf32> to vector<4x32xf32>
    %54 = vector.extract_strided_slice %49 {offsets = [0, 96], sizes = [4, 32], strides = [1, 1]} : vector<4x128xf32> to vector<4x32xf32>
    %55 = arith.mulf %52, %31 : vector<4x32xf32>
    %56 = arith.mulf %51, %53 : vector<4x32xf32>
    %57 = arith.addf %55, %56 : vector<4x32xf32>
    %58 = math.tanh %57 : vector<4x32xf32>
    %59 = arith.mulf %54, %58 : vector<4x32xf32>
    %60 = arith.truncf %59 : vector<4x32xf32> to vector<4x32xbf16>
    %cst_29 = arith.constant dense<0.000000e+00> : vector<4x128xf32>
    %61 = tpu.matmul %60, %41, %cst_29 {dimension_numbers = #tpu.dot_dimension_numbers<[1], [0], [0], [1], [0, 0, 1, 1], [], []>} : vector<4x32xbf16>, vector<32x128xbf16>, vector<4x128xf32> -> vector<4x128xf32>
    %62 = arith.addf %39, %61 : vector<4x128xf32>
    %63 = arith.negf %62 : vector<4x128xf32>
    %64 = math.exp %63 : vector<4x128xf32>
    %cst_30 = arith.constant 1.000000e+00 : f32
    %65 = vector.broadcast %cst_30 : f32 to vector<4x128xf32>
    %66 = arith.addf %65, %64 : vector<4x128xf32>
    %67 = arith.divf %65, %66 : vector<4x128xf32>
    %68 = math.tanh %62 : vector<4x128xf32>
    %69 = vector.extract_strided_slice %67 {offsets = [0, 0], sizes = [4, 32], strides = [1, 1]} : vector<4x128xf32> to vector<4x32xf32>
    %70 = vector.extract_strided_slice %67 {offsets = [0, 32], sizes = [4, 32], strides = [1, 1]} : vector<4x128xf32> to vector<4x32xf32>
    %71 = vector.extract_strided_slice %68 {offsets = [0, 64], sizes = [4, 32], strides = [1, 1]} : vector<4x128xf32> to vector<4x32xf32>
    %72 = vector.extract_strided_slice %67 {offsets = [0, 96], sizes = [4, 32], strides = [1, 1]} : vector<4x128xf32> to vector<4x32xf32>
    %73 = arith.mulf %70, %57 : vector<4x32xf32>
    %74 = arith.mulf %69, %71 : vector<4x32xf32>
    %75 = arith.addf %73, %74 : vector<4x32xf32>
    %76 = math.tanh %75 : vector<4x32xf32>
    %77 = arith.mulf %72, %76 : vector<4x32xf32>
    %78 = arith.truncf %77 : vector<4x32xf32> to vector<4x32xbf16>
    %cst_31 = arith.constant dense<0.000000e+00> : vector<4x128xf32>
    %79 = tpu.matmul %78, %41, %cst_31 {dimension_numbers = #tpu.dot_dimension_numbers<[1], [0], [0], [1], [0, 0, 1, 1], [], []>} : vector<4x32xbf16>, vector<32x128xbf16>, vector<4x128xf32> -> vector<4x128xf32>
    %80 = arith.addf %39, %79 : vector<4x128xf32>
    %81 = arith.negf %80 : vector<4x128xf32>
    %82 = math.exp %81 : vector<4x128xf32>
    %cst_32 = arith.constant 1.000000e+00 : f32
    %83 = vector.broadcast %cst_32 : f32 to vector<4x128xf32>
    %84 = arith.addf %83, %82 : vector<4x128xf32>
    %85 = arith.divf %83, %84 : vector<4x128xf32>
    %86 = math.tanh %80 : vector<4x128xf32>
    %87 = vector.extract_strided_slice %85 {offsets = [0, 0], sizes = [4, 32], strides = [1, 1]} : vector<4x128xf32> to vector<4x32xf32>
    %88 = vector.extract_strided_slice %85 {offsets = [0, 32], sizes = [4, 32], strides = [1, 1]} : vector<4x128xf32> to vector<4x32xf32>
    %89 = vector.extract_strided_slice %86 {offsets = [0, 64], sizes = [4, 32], strides = [1, 1]} : vector<4x128xf32> to vector<4x32xf32>
    %90 = vector.extract_strided_slice %85 {offsets = [0, 96], sizes = [4, 32], strides = [1, 1]} : vector<4x128xf32> to vector<4x32xf32>
    %91 = arith.mulf %88, %75 : vector<4x32xf32>
    %92 = arith.mulf %87, %89 : vector<4x32xf32>
    %93 = arith.addf %91, %92 : vector<4x32xf32>
    %94 = math.tanh %93 : vector<4x32xf32>
    %95 = arith.mulf %90, %94 : vector<4x32xf32>
    %96 = arith.truncf %95 : vector<4x32xf32> to vector<4x32xbf16>
    %cst_33 = arith.constant dense<0.000000e+00> : vector<4x128xf32>
    %97 = tpu.matmul %96, %41, %cst_33 {dimension_numbers = #tpu.dot_dimension_numbers<[1], [0], [0], [1], [0, 0, 1, 1], [], []>} : vector<4x32xbf16>, vector<32x128xbf16>, vector<4x128xf32> -> vector<4x128xf32>
    %98 = arith.addf %39, %97 : vector<4x128xf32>
    %99 = arith.negf %98 : vector<4x128xf32>
    %100 = math.exp %99 : vector<4x128xf32>
    %cst_34 = arith.constant 1.000000e+00 : f32
    %101 = vector.broadcast %cst_34 : f32 to vector<4x128xf32>
    %102 = arith.addf %101, %100 : vector<4x128xf32>
    %103 = arith.divf %101, %102 : vector<4x128xf32>
    %104 = math.tanh %98 : vector<4x128xf32>
    %105 = vector.extract_strided_slice %103 {offsets = [0, 0], sizes = [4, 32], strides = [1, 1]} : vector<4x128xf32> to vector<4x32xf32>
    %106 = vector.extract_strided_slice %103 {offsets = [0, 32], sizes = [4, 32], strides = [1, 1]} : vector<4x128xf32> to vector<4x32xf32>
    %107 = vector.extract_strided_slice %104 {offsets = [0, 64], sizes = [4, 32], strides = [1, 1]} : vector<4x128xf32> to vector<4x32xf32>
    %108 = vector.extract_strided_slice %103 {offsets = [0, 96], sizes = [4, 32], strides = [1, 1]} : vector<4x128xf32> to vector<4x32xf32>
    %109 = arith.mulf %106, %93 : vector<4x32xf32>
    %110 = arith.mulf %105, %107 : vector<4x32xf32>
    %111 = arith.addf %109, %110 : vector<4x32xf32>
    %112 = math.tanh %111 : vector<4x32xf32>
    %113 = arith.mulf %108, %112 : vector<4x32xf32>
    %114 = arith.truncf %113 : vector<4x32xf32> to vector<4x32xbf16>
    %cst_35 = arith.constant dense<0.000000e+00> : vector<4x128xf32>
    %115 = tpu.matmul %114, %41, %cst_35 {dimension_numbers = #tpu.dot_dimension_numbers<[1], [0], [0], [1], [0, 0, 1, 1], [], []>} : vector<4x32xbf16>, vector<32x128xbf16>, vector<4x128xf32> -> vector<4x128xf32>
    %116 = arith.addf %39, %115 : vector<4x128xf32>
    %117 = arith.negf %116 : vector<4x128xf32>
    %118 = math.exp %117 : vector<4x128xf32>
    %cst_36 = arith.constant 1.000000e+00 : f32
    %119 = vector.broadcast %cst_36 : f32 to vector<4x128xf32>
    %120 = arith.addf %119, %118 : vector<4x128xf32>
    %121 = arith.divf %119, %120 : vector<4x128xf32>
    %122 = math.tanh %116 : vector<4x128xf32>
    %123 = vector.extract_strided_slice %121 {offsets = [0, 0], sizes = [4, 32], strides = [1, 1]} : vector<4x128xf32> to vector<4x32xf32>
    %124 = vector.extract_strided_slice %121 {offsets = [0, 32], sizes = [4, 32], strides = [1, 1]} : vector<4x128xf32> to vector<4x32xf32>
    %125 = vector.extract_strided_slice %122 {offsets = [0, 64], sizes = [4, 32], strides = [1, 1]} : vector<4x128xf32> to vector<4x32xf32>
    %126 = vector.extract_strided_slice %121 {offsets = [0, 96], sizes = [4, 32], strides = [1, 1]} : vector<4x128xf32> to vector<4x32xf32>
    %127 = arith.mulf %124, %111 : vector<4x32xf32>
    %128 = arith.mulf %123, %125 : vector<4x32xf32>
    %129 = arith.addf %127, %128 : vector<4x32xf32>
    %130 = math.tanh %129 : vector<4x32xf32>
    %131 = arith.mulf %126, %130 : vector<4x32xf32>
    %132 = arith.truncf %131 : vector<4x32xf32> to vector<4x32xbf16>
    %cst_37 = arith.constant dense<0.000000e+00> : vector<4x128xf32>
    %133 = tpu.matmul %132, %41, %cst_37 {dimension_numbers = #tpu.dot_dimension_numbers<[1], [0], [0], [1], [0, 0, 1, 1], [], []>} : vector<4x32xbf16>, vector<32x128xbf16>, vector<4x128xf32> -> vector<4x128xf32>
    %134 = arith.addf %39, %133 : vector<4x128xf32>
    %135 = arith.negf %134 : vector<4x128xf32>
    %136 = math.exp %135 : vector<4x128xf32>
    %cst_38 = arith.constant 1.000000e+00 : f32
    %137 = vector.broadcast %cst_38 : f32 to vector<4x128xf32>
    %138 = arith.addf %137, %136 : vector<4x128xf32>
    %139 = arith.divf %137, %138 : vector<4x128xf32>
    %140 = math.tanh %134 : vector<4x128xf32>
    %141 = vector.extract_strided_slice %139 {offsets = [0, 0], sizes = [4, 32], strides = [1, 1]} : vector<4x128xf32> to vector<4x32xf32>
    %142 = vector.extract_strided_slice %139 {offsets = [0, 32], sizes = [4, 32], strides = [1, 1]} : vector<4x128xf32> to vector<4x32xf32>
    %143 = vector.extract_strided_slice %140 {offsets = [0, 64], sizes = [4, 32], strides = [1, 1]} : vector<4x128xf32> to vector<4x32xf32>
    %144 = vector.extract_strided_slice %139 {offsets = [0, 96], sizes = [4, 32], strides = [1, 1]} : vector<4x128xf32> to vector<4x32xf32>
    %145 = arith.mulf %142, %129 : vector<4x32xf32>
    %146 = arith.mulf %141, %143 : vector<4x32xf32>
    %147 = arith.addf %145, %146 : vector<4x32xf32>
    %148 = math.tanh %147 : vector<4x32xf32>
    %149 = arith.mulf %144, %148 : vector<4x32xf32>
    %150 = arith.truncf %149 : vector<4x32xf32> to vector<4x32xbf16>
    %cst_39 = arith.constant dense<0.000000e+00> : vector<4x128xf32>
    %151 = tpu.matmul %150, %41, %cst_39 {dimension_numbers = #tpu.dot_dimension_numbers<[1], [0], [0], [1], [0, 0, 1, 1], [], []>} : vector<4x32xbf16>, vector<32x128xbf16>, vector<4x128xf32> -> vector<4x128xf32>
    %152 = arith.addf %39, %151 : vector<4x128xf32>
    %153 = arith.negf %152 : vector<4x128xf32>
    %154 = math.exp %153 : vector<4x128xf32>
    %cst_40 = arith.constant 1.000000e+00 : f32
    %155 = vector.broadcast %cst_40 : f32 to vector<4x128xf32>
    %156 = arith.addf %155, %154 : vector<4x128xf32>
    %157 = arith.divf %155, %156 : vector<4x128xf32>
    %158 = math.tanh %152 : vector<4x128xf32>
    %159 = vector.extract_strided_slice %157 {offsets = [0, 0], sizes = [4, 32], strides = [1, 1]} : vector<4x128xf32> to vector<4x32xf32>
    %160 = vector.extract_strided_slice %157 {offsets = [0, 32], sizes = [4, 32], strides = [1, 1]} : vector<4x128xf32> to vector<4x32xf32>
    %161 = vector.extract_strided_slice %158 {offsets = [0, 64], sizes = [4, 32], strides = [1, 1]} : vector<4x128xf32> to vector<4x32xf32>
    %162 = vector.extract_strided_slice %157 {offsets = [0, 96], sizes = [4, 32], strides = [1, 1]} : vector<4x128xf32> to vector<4x32xf32>
    %163 = arith.mulf %160, %147 : vector<4x32xf32>
    %164 = arith.mulf %159, %161 : vector<4x32xf32>
    %165 = arith.addf %163, %164 : vector<4x32xf32>
    %166 = math.tanh %165 : vector<4x32xf32>
    %167 = arith.mulf %162, %166 : vector<4x32xf32>
    %168 = arith.truncf %167 : vector<4x32xf32> to vector<4x32xbf16>
    %cst_41 = arith.constant dense<0.000000e+00> : vector<4x128xf32>
    %169 = tpu.matmul %168, %41, %cst_41 {dimension_numbers = #tpu.dot_dimension_numbers<[1], [0], [0], [1], [0, 0, 1, 1], [], []>} : vector<4x32xbf16>, vector<32x128xbf16>, vector<4x128xf32> -> vector<4x128xf32>
    %170 = arith.addf %39, %169 : vector<4x128xf32>
    %171 = arith.negf %170 : vector<4x128xf32>
    %172 = math.exp %171 : vector<4x128xf32>
    %cst_42 = arith.constant 1.000000e+00 : f32
    %173 = vector.broadcast %cst_42 : f32 to vector<4x128xf32>
    %174 = arith.addf %173, %172 : vector<4x128xf32>
    %175 = arith.divf %173, %174 : vector<4x128xf32>
    %176 = math.tanh %170 : vector<4x128xf32>
    %177 = vector.extract_strided_slice %175 {offsets = [0, 0], sizes = [4, 32], strides = [1, 1]} : vector<4x128xf32> to vector<4x32xf32>
    %178 = vector.extract_strided_slice %175 {offsets = [0, 32], sizes = [4, 32], strides = [1, 1]} : vector<4x128xf32> to vector<4x32xf32>
    %179 = vector.extract_strided_slice %176 {offsets = [0, 64], sizes = [4, 32], strides = [1, 1]} : vector<4x128xf32> to vector<4x32xf32>
    %180 = vector.extract_strided_slice %175 {offsets = [0, 96], sizes = [4, 32], strides = [1, 1]} : vector<4x128xf32> to vector<4x32xf32>
    %181 = arith.mulf %178, %165 : vector<4x32xf32>
    %182 = arith.mulf %177, %179 : vector<4x32xf32>
    %183 = arith.addf %181, %182 : vector<4x32xf32>
    %184 = math.tanh %183 : vector<4x32xf32>
    %185 = arith.mulf %180, %184 : vector<4x32xf32>
    %186 = tpu.concatenate %59, %77, %95, %113, %131, %149, %167, %185 in 1 : vector<4x32xf32>, vector<4x32xf32>, vector<4x32xf32>, vector<4x32xf32>, vector<4x32xf32>, vector<4x32xf32>, vector<4x32xf32>, vector<4x32xf32> -> vector<4x256xf32>
    %c0_43 = arith.constant 0 : index
    %c0_44 = arith.constant 0 : index
    %187 = vector.load %arg11[%c0_43, %c0_44] : memref<4x256xf32, #tpu.memory_space<vmem>>, vector<4x256xf32>
    tpu.vector_store %arg11[%c0_43, %c0_44], %186 {strides = array<i32>} : memref<4x256xf32, #tpu.memory_space<vmem>>, vector<4x256xf32>,
    return
  }
  func.func @transform_0(%arg0: i32) -> (i32, i32) {
    %c0_i32 = arith.constant 0 : i32
    %c0_i32_0 = arith.constant 0 : i32
    %c0_i32_1 = arith.constant 0 : i32
    return %c0_i32, %c0_i32_0 : i32, i32
  }
  func.func @transform_1(%arg0: i32) -> (i32, i32) {
    %c0_i32 = arith.constant 0 : i32
    %c0_i32_0 = arith.constant 0 : i32
    %c0_i32_1 = arith.constant 0 : i32
    return %c0_i32, %c0_i32_0 : i32, i32
  }
  func.func @transform_2(%arg0: i32) -> (i32, i32) {
    %c0_i32 = arith.constant 0 : i32
    %c0_i32_0 = arith.constant 0 : i32
    %c0_i32_1 = arith.constant 0 : i32
    return %c0_i32, %c0_i32_0 : i32, i32
  }
  func.func @transform_3(%arg0: i32) -> (i32, i32) {
    %c0_i32 = arith.constant 0 : i32
    %c0_i32_0 = arith.constant 0 : i32
    %c0_i32_1 = arith.constant 0 : i32
    return %c0_i32, %c0_i32_0 : i32, i32
  }
  func.func @transform_4(%arg0: i32) -> (i32, i32) {
    %c0_i32 = arith.constant 0 : i32
    %c0_i32_0 = arith.constant 0 : i32
    %c0_i32_1 = arith.constant 0 : i32
    return %c0_i32, %c0_i32_0 : i32, i32
  }
  func.func @transform_5(%arg0: i32) -> (i32, i32) {
    %c0_i32 = arith.constant 0 : i32
    %c0_i32_0 = arith.constant 0 : i32
    %c0_i32_1 = arith.constant 0 : i32
    return %c0_i32, %c0_i32_0 : i32, i32
  }
  func.func @transform_6(%arg0: i32) -> (i32, i32) {
    %c0_i32 = arith.constant 0 : i32
    %c0_i32_0 = arith.constant 0 : i32
    %c0_i32_1 = arith.constant 0 : i32
    return %c0_i32, %c0_i32_0 : i32, i32
  }
  func.func @transform_7(%arg0: i32) -> (i32, i32) {
    %c0_i32 = arith.constant 0 : i32
    %c0_i32_0 = arith.constant 0 : i32
    %c0_i32_1 = arith.constant 0 : i32
    return %c0_i32, %c0_i32_0 : i32, i32
  }
  func.func @transform_8(%arg0: i32) -> (i32, i32) {
    %c0_i32 = arith.constant 0 : i32
    %c0_i32_0 = arith.constant 0 : i32
    %c0_i32_1 = arith.constant 0 : i32
    return %c0_i32, %c0_i32_0 : i32, i32
  }
  func.func @transform_9(%arg0: i32) -> (i32, i32) {
    %c0_i32 = arith.constant 0 : i32
    %c0_i32_0 = arith.constant 0 : i32
    %c0_i32_1 = arith.constant 0 : i32
    return %c0_i32, %c0_i32_0 : i32, i32
  }
  func.func @transform_10(%arg0: i32) -> (i32, i32) {
    %c0_i32 = arith.constant 0 : i32
    %c0_i32_0 = arith.constant 0 : i32
    %c0_i32_1 = arith.constant 0 : i32
    return %c0_i32, %c0_i32_0 : i32, i32
  }
}

</mosaic_0001>

<bundles_post_ra>
// kernel: lstm_decoder_forward.1
= control target key start
LH: loop header
LB: loop body
LE: loop exit
PB: predicated region body
PF: predicated region fallthrough
CT: control target
= control target key end

     0   :  { %v1379_v0 = vmov 0.0|0.0   ;;  %vm1380_vm0 = vmmov 0   ;;  %v1381_v8 = vmov 0.0   ;;  %vm54_vm1 = vcmask 261120   ;;  %s1691_s2 = inlined_call_operand.vmem [shape: f32[64,32], index: 2, kind: input, shape index: {}]   ;;  %s1692_s4 = inlined_call_operand.vmem [shape: f32[64,32], index: 4, kind: input, shape index: {}]   ;;  %s1693_s1 = inlined_call_operand.vmem [shape: f32[4,32], index: 1, kind: input, shape index: {}]   ;;  %s1694_s0 = inlined_call_operand.vmem [shape: f32[4,32], index: 0, kind: input, shape index: {}]   ;;  %s1695_s6 = inlined_call_operand.vmem [shape: f32[32,128], index: 6, kind: input, shape index: {}]   ;;  %s1696_s8 = inlined_call_operand.vmem [shape: f32[32,128], index: 8, kind: input, shape index: {}]   ;;  %s1697_s3 = inlined_call_operand.vmem [shape: f32[1,32], index: 3, kind: input, shape index: {}]   ;;  %s1698_s5 = inlined_call_operand.vmem [shape: f32[1,32], index: 5, kind: input, shape index: {}]   ;;  %s1699_s7 = inlined_call_operand.vmem [shape: f32[1,128], index: 7, kind: input, shape index: {}]   ;;  %s1700_s9 = inlined_call_operand.vmem [shape: f32[1,128], index: 9, kind: input, shape index: {}]   ;;  %s1701_s10 = inlined_call_operand.vmem [shape: f32[4,256], index: 10, kind: output, shape index: {}]  }
   0x1   :  { %1275 = vmatprep.subr.bf16.mxu0 %v1379_v0  ;;  %1281 = vmatprep.subr.bf16.mxu1 %v1379_v0  ;;  %v42_v1 = vld [vmem:[%s1691_s2 + $0x20] sm:$0xff]  ;;  %v43_v2 = vld [vmem:[%s1691_s2 + $0x28] sm:$0xff]  ;;  %v44_v6 = vld [vmem:[%s1691_s2 + $0x30] sm:$0xff]  ;;  %vm1064_vm4 = vcmask 523264   ;;  %vm1066_vm5 = vcmask 785408  }
   0x2   :  { %v38_v3 = vld [vmem:[%s1691_s2] sm:$0xff]  ;;  %v1276_v4 = vpack.c.bf16 %v43_v2, %v42_v1  ;;  %v39_v5 = vld [vmem:[%s1691_s2 + $0x8] sm:$0xff]  ;;  %v45_v7 = vld [vmem:[%s1691_s2 + $0x38] sm:$0xff]  ;;  %1164 = vmatprep.mubr.msk.f32.mxu0 %vm1380_vm0, %v1381_v8  ;;  %1175 = vmatprep.mubr.msk.f32.mxu1 %vm1380_vm0, %v1381_v8 }
   0x3   :  { %v1282_v9 = vpack.c.bf16 %v39_v5, %v38_v3  ;;  %v40_v10 = vld [vmem:[%s1691_s2 + $0x10] sm:$0xff]  ;;  %v41_v11 = vld [vmem:[%s1691_s2 + $0x18] sm:$0xff]  ;;  %v1279_v12 = vpack.c.bf16 %v45_v7, %v44_v6  ;;  %v50_v14 = vld [vmem:[%s1692_s4 + $0x20] sm:$0xff] }
   0x4   :  { %1277 = vmatpush3.bf16.msra.mxu0 %v1276_v4  ;;  %v1285_v13 = vpack.c.bf16 %v41_v11, %v40_v10  ;;  %v51_v15 = vld [vmem:[%s1692_s4 + $0x28] sm:$0xff]  ;;  %v46_v16 = vld [vmem:[%s1692_s4] sm:$0xff]  ;;  %v52_v22 = vld [vmem:[%s1692_s4 + $0x30] sm:$0xff] }
   0x5   :  { %1283 = vmatpush3.bf16.msra.mxu1 %v1282_v9  ;;  %1278 = vmatprep.subr.bf16.mxu0 %v1379_v0  ;;  %v47_v17 = vld [vmem:[%s1692_s4 + $0x8] sm:$0xff]  ;;  %v37_v18 = vld [vmem:[%s1693_s1] sm:$0xf]  ;;  %v1288_v19 = vpack.c.bf16 %v51_v15, %v50_v14  ;;  %v53_v23 = vld [vmem:[%s1692_s4 + $0x38] sm:$0xff] }
   0x6   :  { %1284 = vmatprep.subr.bf16.mxu1 %v1379_v0  ;;  %v36_v20 = vld [vmem:[%s1694_s0] sm:$0xf]  ;;  %v1294_v21 = vpack.c.bf16 %v47_v17, %v46_v16  ;;  %v48_v24 = vld [vmem:[%s1692_s4 + $0x10] sm:$0xff]  ;;  %v49_v25 = vld [vmem:[%s1692_s4 + $0x18] sm:$0xff]  ;;  %v1291_v26 = vpack.c.bf16 %v53_v23, %v52_v22 }
   0x7   :  { %v1297_v27 = vpack.c.bf16 %v49_v25, %v48_v24  ;;  %v367_v28 = vld [vmem:[%s1695_s6] sm:$0xff]  ;;  %v368_v29 = vld [vmem:[%s1695_s6 + $0x8] sm:$0xff]  ;;  %v369_v31 = vld [vmem:[%s1695_s6 + $0x10] sm:$0xff] }
   0x8   :  { %1280 = vmatpush3.bf16.msra.mxu0 %v1279_v12  ;;  %v1300_v30 = vpack.c.bf16 %v368_v29, %v367_v28  ;;  %v370_v32 = vld [vmem:[%s1695_s6 + $0x18] sm:$0xff]  ;;  %v456_v34 = vld [vmem:[%s1696_s8] sm:$0xff]  ;;  %v457_v35 = vld [vmem:[%s1696_s8 + $0x8] sm:$0xff] }
   0x9   :  { %1286 = vmatpush3.bf16.msra.mxu1 %v1285_v13  ;;  %1287 = vmatprep.subr.bf16.mxu0 %v1379_v0  ;;  %v1303_v33 = vpack.c.bf16 %v370_v32, %v369_v31  ;;  %v1539_v36 = vpack.c.bf16 %v457_v35, %v456_v34  ;;  %v458_v37 = vld [vmem:[%s1696_s8 + $0x10] sm:$0xff]  ;;  %v459_v38 = vld [vmem:[%s1696_s8 + $0x18] sm:$0xff]  ;;  %v1082_v42 = vld [vmem:[%s1697_s3] ss:$0 sm:$0xff] }
   0xa   :  { %1293 = vmatprep.subr.bf16.mxu1 %v1379_v0  ;;  %v1551_v39 = vpack.c.bf16 %v459_v38, %v458_v37  ;;  %v1086_v59 = vld [vmem:[%s1698_s5] ss:$0 sm:$0xff]  ;;  %s1382_s5 = smov 64  }
   0xb   :  { %1165 = vmatmul.mubr.msk.f32.vlgmr.msra.gmra.mrb[0].mxu0 %vm54_vm1, %v37_v18  ;;  %v1088_v60 = vld [vmem:[%s1699_s7] ss:$0 sm:$0xff]  ;;  %s1383_s7 = smov 32  }
   0xc   :  { %1176 = vmatmul.mubr.msk.f32.vlgmr.msra.gmra.mrb[0].mxu1 %vm54_vm1, %v36_v20  ;;  %1289 = vmatpush3.bf16.msra.mxu0 %v1288_v19  ;;  %v1090_v63 = vld [vmem:[%s1700_s9] ss:$0 sm:$0xff]  ;;  %s1384_s9 = smov 96  }
   0xd   :  { %1295 = vmatpush3.bf16.msra.mxu1 %v1294_v21  ;;  %1290 = vmatprep.subr.bf16.mxu0 %v1379_v0 }
   0xe   :  { %1296 = vmatprep.subr.bf16.mxu1 %v1379_v0  ;;  %1186 = vmatprep.mubr.msk.f32.mxu0 %vm1380_vm0, %v1381_v8 }
   0xf   :  { %1197 = vmatprep.mubr.msk.f32.mxu1 %vm1380_vm0, %v1381_v8 }
  0x10   :  { %1292 = vmatpush3.bf16.msra.mxu0 %v1291_v26 }
  0x11   :  { %1298 = vmatpush3.bf16.msra.mxu1 %v1297_v27  ;;  %1299 = vmatprep.subr.bf16.mxu0 %v1379_v0 }
  0x12   :  { %1211 = vmatprep.subr.bf16.mxu1 %v1381_v8 }
  0x13   :  { %1187 = vmatmul.mubr.msk.f32.vlgmr.msra.gmra.mrb[2].mxu0 %vm54_vm1, %v37_v18 }
  0x14   :  { %1198 = vmatmul.mubr.msk.f32.vlgmr.msra.gmra.mrb[2].mxu1 %vm54_vm1, %v36_v20  ;;  %1208 = vmatprep.mubr.msk.f32.mxu0 %vm1380_vm0, %v1381_v8 }
  0x15   :  { %1215 = vmatprep.mubr.msk.bf16.mxu1 %vm1380_vm0, %v1381_v8  ;;  %1301 = vmatpush3.bf16.msra.mxu0 %v1300_v30 }
  0x16   :  { %1302 = vmatprep.subr.bf16.mxu0 %v1379_v0  ;;  %1212 = vmatpush3.bf16.msra.mxu1 %v1539_v36 }
  0x17   :  { %1213 = vmatprep.subr.bf16.mxu1 %v1381_v8 }
  0x19   :  { %1304 = vmatpush3.bf16.msra.mxu0 %v1303_v33 }
  0x1a   :  { %1219 = vmatprep.subr.bf16.mxu0 %v1381_v8  ;;  %1214 = vmatpush3.bf16.msra.mxu1 %v1551_v39 }
  0x1b   :  { %1227 = vmatprep.subr.bf16.mxu1 %v1381_v8 }
  0x1c   :  { %1209 = vmatmul.mubr.msk.f32.vlgmr.msra.gmra.mrb[4].mxu0 %vm54_vm1, %v36_v20 }
  0x1d   :  { %1220 = vmatpush3.bf16.msra.mxu0 %v1539_v36  ;;  %1223 = vmatprep.mubr.msk.bf16.mxu0 %vm1380_vm0, %v1381_v8 }
  0x1e   :  { %1221 = vmatprep.subr.bf16.mxu0 %v1381_v8 }
  0x21   :  { %1222 = vmatpush3.bf16.msra.mxu0 %v1551_v39 }
  0x22   :  { %1235 = vmatprep.subr.bf16.mxu0 %v1381_v8 }
  0xde   :  { %v124_v40 = vpop.f32.mrb[0].mxu0 }
  0xdf   :  { %v197_v41 = vpop.f32.mrb[0].mxu1  ;;  %v1166_v43 = vpop.f32.mrb[1].mxu0 }
  0xe0   :  { %v198_v44 = vadd.f32 %v197_v41, %v124_v40  ;;  %v1177_v45 = vpop.f32.mrb[1].mxu1 }
  0xe2   :  { %v208_v46 = vadd.f32 %v1082_v42, %v198_v44 }
  0xe4   :  { %v210_v47 = vmul.f32 1.442695, %v208_v46  ;;  %vm209_vm2 = vcmp.gt.f32.partialorder %v208_v46, 0.0 }
  0xe6   :  { %1311 = vpow2.f32 %v210_v47  ;;  %v280_v48 = vpop.f32.mrb[2].mxu0 }
  0xe7   :  { %v350_v49 = vpop.f32.mrb[2].mxu1  ;;  %v1188_v50 = vpop.f32.mrb[3].mxu0 }
  0xe8   :  { %v351_v51 = vadd.f32 %v350_v49, %v280_v48  ;;  %v1199_v52 = vpop.f32.mrb[3].mxu1 }
  0xea   :  { %v361_v61 = vadd.f32 %v1086_v59, %v351_v51 }
  0xec   :  { %v363_v0 = vmul.f32 1.442695, %v361_v61  ;;  %vm362_vm3 = vcmp.gt.f32.partialorder %v361_v61, 0.0 }
  0xee   :  { %1313 = vpow2.f32 %v363_v0 }
  0xef   :  { %v444_v57 = vpop.f32.mrb[4].mxu0 }
  0xf0   :  { %v1312_v53 = vpop.eup %1311  ;;  %v1210_v58 = vpop.f32.mrb[5].mxu0  ;;  %v445_v62 = vadd.f32 %v1088_v60, %v444_v57 }
  0xf1   :  { %v1083_v54 = vadd.f32 -1.0, %v1312_v53 }
  0xf2   :  { %v1580_v1 = vadd.f32 %v1090_v63, %v445_v62 }
  0xf3   :  { %v213_v55 = vsel %vm209_vm2, %v208_v46, %v1083_v54 }
  0xf4   :  { %v462_v56 = vpack.c.bf16 %v213_v55, %v213_v55 }
  0xf6   :  { %1216 = vmatmul.mubr.msk.bf16.vlgmr.msra.gmra.mrb[4].mxu1 %vm54_vm1, %v462_v56 }
  0xf7   :  { %1228 = vmatpush3.bf16.msra.mxu1 %v1539_v36  ;;  %1231 = vmatprep.mubr.msk.bf16.mxu1 %vm1380_vm0, %v1381_v8 }
  0xf8   :  { %1229 = vmatprep.subr.bf16.mxu1 %v1381_v8  ;;  %v1314_v7 = vpop.eup %1313 }
  0xf9   :  { %v1087_v10 = vadd.f32 -1.0, %v1314_v7 }
  0xfb   :  { %1230 = vmatpush3.bf16.msra.mxu1 %v1551_v39  ;;  %v366_v11 = vsel %vm362_vm3, %v361_v61, %v1087_v10 }
  0xfc   :  { %1243 = vmatprep.subr.bf16.mxu1 %v1381_v8 }
 0x1c9   :  { %v500_v2 = vpop.f32.mrb[4].mxu1 }
 0x1ca   :  { %v506_v3 = vadd.f32 %v500_v2, %v1580_v1  ;;  %v1217_v4 = vpop.f32.mrb[5].mxu1 }
 0x1cb   :  { %v503_v5 = vpop.f32.mrb[6].mxu1 }
 0x1cc   :  { %1315 = vtanh.f32 %v506_v3  ;;  %v1218_v6 = vpop.f32.mrb[7].mxu1  ;;  %v1092_v12 = vmul.f32 -1.442695, %v506_v3 }
 0x1ce   :  { %1317 = vpow2.f32 %v1092_v12 }
 0x1d6   :  { %v1316_v9 = vpop.eup %1315 }
 0x1d7   :  { %520 = vrot.lane.b32.xlu0 %v1316_v9, %s1382_s5 }
 0x1d8   :  { %v1318_v13 = vpop.eup %1317 }
 0x1d9   :  { %v510_v14 = vadd.f32 1.0, %v1318_v13 }
 0x1db   :  { %515 = vrot.lane.b32.xlu0 %v366_v11, %s1383_s7  ;;  %1319 = vrcp.f32 %v510_v14 }
 0x1e5   :  { %v1320_v15 = vpop.eup %1319 }
 0x249   :  { %v521_v16 = vpop.permute.xlu0 %520 }
 0x24a   :  { %v523_v17 = vmul.f32 %v1320_v15, %v521_v16 }
 0x24c   :  { %525 = vrot.lane.b32.xlu1 %v523_v17, %s1383_s7 }
 0x24d   :  { %v516_v18 = vpop.permute.xlu0 %515 }
 0x24e   :  { %v518_v19 = vmul.f32 %v1320_v15, %v516_v18 }
 0x2be   :  { %v526_v20 = vpop.permute.xlu1 %525 }
 0x2bf   :  { %v528_v21 = vadd.f32 %v526_v20, %v518_v19 }
 0x2c1   :  { %1321 = vtanh.f32 %v528_v21 }
 0x2cb   :  { %v1322_v22 = vpop.eup %1321 }
 0x2cc   :  { %531 = vrot.lane.b32.xlu1 %v1322_v22, %s1382_s5 }
 0x33e   :  { %v532_v23 = vpop.permute.xlu1 %531 }
 0x33f   :  { %v1587_v24 = vmul.f32 %v1320_v15, %v532_v23 }
 0x341   :  { %v535_v25 = vpack.c.bf16 %v1587_v24, %v1587_v24 }
 0x343   :  { %537 = vrot.lane.b32.xlu0 %v535_v25, %s1383_s7 }
 0x3b5   :  { %v538_v26 = vpop.permute.xlu0 %537 }
 0x3b6   :  { %1224 = vmatmul.mubr.msk.bf16.vlgmr.msra.gmra.mrb[8].mxu0 %vm54_vm1, %v538_v26 }
 0x3b7   :  { %1236 = vmatpush3.bf16.msra.mxu0 %v1539_v36  ;;  %1239 = vmatprep.mubr.msk.bf16.mxu0 %vm1380_vm0, %v1381_v8 }
 0x3b8   :  { %1237 = vmatprep.subr.bf16.mxu0 %v1381_v8 }
 0x3bb   :  { %1238 = vmatpush3.bf16.msra.mxu0 %v1551_v39 }
 0x3bc   :  { %1251 = vmatprep.subr.bf16.mxu0 %v1381_v8 }
 0x489   :  { %v576_v27 = vpop.f32.mrb[8].mxu0 }
 0x48a   :  { %v582_v28 = vadd.f32 %v576_v27, %v1580_v1  ;;  %v1225_v29 = vpop.f32.mrb[9].mxu0 }
 0x48b   :  { %v579_v30 = vpop.f32.mrb[10].mxu0 }
 0x48c   :  { %1323 = vtanh.f32 %v582_v28  ;;  %v1226_v31 = vpop.f32.mrb[11].mxu0  ;;  %v1094_v33 = vmul.f32 -1.442695, %v582_v28 }
 0x48e   :  { %1325 = vpow2.f32 %v1094_v33 }
 0x496   :  { %v1324_v32 = vpop.eup %1323 }
 0x497   :  { %592 = vrot.lane.b32.xlu1 %v1324_v32, %s1382_s5 }
 0x498   :  { %v1326_v34 = vpop.eup %1325 }
 0x499   :  { %v586_v35 = vadd.f32 1.0, %v1326_v34 }
 0x49b   :  { %1327 = vrcp.f32 %v586_v35 }
 0x4a5   :  { %v1328_v37 = vpop.eup %1327 }
 0x4a6   :  { %v590_v41 = vmul.f32 %v1328_v37, %v528_v21 }
 0x509   :  { %v593_v38 = vpop.permute.xlu1 %592 }
 0x50a   :  { %v595_v40 = vmul.f32 %v1328_v37, %v593_v38 }
 0x50c   :  { %597 = vrot.lane.b32.xlu0 %v595_v40, %s1383_s7 }
 0x57e   :  { %v598_v42 = vpop.permute.xlu0 %597 }
 0x57f   :  { %v600_v43 = vadd.f32 %v598_v42, %v590_v41 }
 0x581   :  { %1329 = vtanh.f32 %v600_v43 }
 0x58b   :  { %v1330_v44 = vpop.eup %1329 }
 0x58c   :  { %603 = vrot.lane.b32.xlu1 %v1330_v44, %s1382_s5 }
 0x5fe   :  { %v604_v45 = vpop.permute.xlu1 %603 }
 0x5ff   :  { %v1603_v46 = vmul.f32 %v1328_v37, %v604_v45 }
 0x601   :  { %v607_v47 = vpack.c.bf16 %v1603_v46, %v1603_v46 }
 0x603   :  { %609 = vrot.lane.b32.xlu0 %v607_v47, %s1383_s7 }
 0x675   :  { %v610_v48 = vpop.permute.xlu0 %609 }
 0x676   :  { %1232 = vmatmul.mubr.msk.bf16.vlgmr.msra.gmra.mrb[8].mxu1 %vm54_vm1, %v610_v48 }
 0x677   :  { %1244 = vmatpush3.bf16.msra.mxu1 %v1539_v36  ;;  %1247 = vmatprep.mubr.msk.bf16.mxu1 %vm1380_vm0, %v1381_v8 }
 0x678   :  { %1245 = vmatprep.subr.bf16.mxu1 %v1381_v8 }
 0x67b   :  { %1246 = vmatpush3.bf16.msra.mxu1 %v1551_v39 }
 0x67c   :  { %1259 = vmatprep.subr.bf16.mxu1 %v1381_v8 }
 0x749   :  { %v648_v49 = vpop.f32.mrb[8].mxu1 }
 0x74a   :  { %v654_v50 = vadd.f32 %v648_v49, %v1580_v1  ;;  %v1233_v51 = vpop.f32.mrb[9].mxu1 }
 0x74b   :  { %v651_v52 = vpop.f32.mrb[10].mxu1 }
 0x74c   :  { %1331 = vtanh.f32 %v654_v50  ;;  %v1234_v53 = vpop.f32.mrb[11].mxu1  ;;  %v1096_v55 = vmul.f32 -1.442695, %v654_v50 }
 0x74e   :  { %1333 = vpow2.f32 %v1096_v55 }
 0x756   :  { %v1332_v54 = vpop.eup %1331 }
 0x757   :  { %664 = vrot.lane.b32.xlu1 %v1332_v54, %s1382_s5 }
 0x758   :  { %v1334_v56 = vpop.eup %1333 }
 0x759   :  { %v658_v57 = vadd.f32 1.0, %v1334_v56 }
 0x75b   :  { %1335 = vrcp.f32 %v658_v57 }
 0x765   :  { %v1336_v58 = vpop.eup %1335 }
 0x766   :  { %v662_v61 = vmul.f32 %v1336_v58, %v600_v43 }
 0x7c9   :  { %v665_v59 = vpop.permute.xlu1 %664 }
 0x7ca   :  { %v667_v60 = vmul.f32 %v1336_v58, %v665_v59 }
 0x7cc   :  { %669 = vrot.lane.b32.xlu0 %v667_v60, %s1383_s7 }
 0x83e   :  { %v670_v62 = vpop.permute.xlu0 %669 }
 0x83f   :  { %v672_v63 = vadd.f32 %v670_v62, %v662_v61 }
 0x841   :  { %1337 = vtanh.f32 %v672_v63 }
 0x84b   :  { %v1338_v0 = vpop.eup %1337 }
 0x84c   :  { %675 = vrot.lane.b32.xlu1 %v1338_v0, %s1382_s5 }
 0x8be   :  { %v676_v2 = vpop.permute.xlu1 %675 }
 0x8bf   :  { %v1619_v3 = vmul.f32 %v1336_v58, %v676_v2 }
 0x8c1   :  { %v679_v4 = vpack.c.bf16 %v1619_v3, %v1619_v3 }
 0x8c3   :  { %681 = vrot.lane.b32.xlu0 %v679_v4, %s1383_s7 }
 0x935   :  { %v682_v5 = vpop.permute.xlu0 %681 }
 0x936   :  { %1240 = vmatmul.mubr.msk.bf16.vlgmr.msra.gmra.mrb[12].mxu0 %vm54_vm1, %v682_v5 }
 0x937   :  { %1252 = vmatpush3.bf16.msra.mxu0 %v1539_v36  ;;  %1255 = vmatprep.mubr.msk.bf16.mxu0 %vm1380_vm0, %v1381_v8 }
 0x938   :  { %1253 = vmatprep.subr.bf16.mxu0 %v1381_v8 }
 0x93b   :  { %1254 = vmatpush3.bf16.msra.mxu0 %v1551_v39 }
 0x93c   :  { %1267 = vmatprep.subr.bf16.mxu0 %v1381_v8 }
 0xa09   :  { %v720_v6 = vpop.f32.mrb[12].mxu0 }
 0xa0a   :  { %v726_v7 = vadd.f32 %v720_v6, %v1580_v1  ;;  %v1241_v9 = vpop.f32.mrb[13].mxu0 }
 0xa0b   :  { %v723_v10 = vpop.f32.mrb[14].mxu0 }
 0xa0c   :  { %1339 = vtanh.f32 %v726_v7  ;;  %v1242_v11 = vpop.f32.mrb[15].mxu0  ;;  %v1098_v13 = vmul.f32 -1.442695, %v726_v7 }
 0xa0e   :  { %1341 = vpow2.f32 %v1098_v13 }
 0xa16   :  { %v1340_v12 = vpop.eup %1339 }
 0xa17   :  { %736 = vrot.lane.b32.xlu1 %v1340_v12, %s1382_s5 }
 0xa18   :  { %v1342_v14 = vpop.eup %1341 }
 0xa19   :  { %v730_v15 = vadd.f32 1.0, %v1342_v14 }
 0xa1b   :  { %1343 = vrcp.f32 %v730_v15 }
 0xa25   :  { %v1344_v16 = vpop.eup %1343 }
 0xa26   :  { %v734_v19 = vmul.f32 %v1344_v16, %v672_v63 }
 0xa89   :  { %v737_v17 = vpop.permute.xlu1 %736 }
 0xa8a   :  { %v739_v18 = vmul.f32 %v1344_v16, %v737_v17 }
 0xa8c   :  { %741 = vrot.lane.b32.xlu0 %v739_v18, %s1383_s7 }
 0xafe   :  { %v742_v20 = vpop.permute.xlu0 %741 }
 0xaff   :  { %v744_v21 = vadd.f32 %v742_v20, %v734_v19 }
 0xb01   :  { %1345 = vtanh.f32 %v744_v21 }
 0xb0b   :  { %v1346_v22 = vpop.eup %1345 }
 0xb0c   :  { %747 = vrot.lane.b32.xlu1 %v1346_v22, %s1382_s5 }
 0xb7e   :  { %v748_v23 = vpop.permute.xlu1 %747 }
 0xb7f   :  { %v1635_v25 = vmul.f32 %v1344_v16, %v748_v23 }
 0xb81   :  { %v751_v26 = vpack.c.bf16 %v1635_v25, %v1635_v25 }
 0xb83   :  { %753 = vrot.lane.b32.xlu0 %v751_v26, %s1383_s7 }
 0xbf5   :  { %v754_v27 = vpop.permute.xlu0 %753 }
 0xbf6   :  { %1248 = vmatmul.mubr.msk.bf16.vlgmr.msra.gmra.mrb[12].mxu1 %vm54_vm1, %v754_v27 }
 0xbf7   :  { %1260 = vmatpush3.bf16.msra.mxu1 %v1539_v36  ;;  %1263 = vmatprep.mubr.msk.bf16.mxu1 %vm1380_vm0, %v1381_v8 }
 0xbf8   :  { %1261 = vmatprep.subr.bf16.mxu1 %v1381_v8 }
 0xbfb   :  { %1262 = vmatpush3.bf16.msra.mxu1 %v1551_v39 }
 0xcc9   :  { %v792_v28 = vpop.f32.mrb[12].mxu1 }
 0xcca   :  { %v798_v29 = vadd.f32 %v792_v28, %v1580_v1  ;;  %v1249_v30 = vpop.f32.mrb[13].mxu1 }
 0xccb   :  { %v795_v31 = vpop.f32.mrb[14].mxu1 }
 0xccc   :  { %1347 = vtanh.f32 %v798_v29  ;;  %v1250_v32 = vpop.f32.mrb[15].mxu1  ;;  %v1100_v34 = vmul.f32 -1.442695, %v798_v29 }
 0xcce   :  { %1349 = vpow2.f32 %v1100_v34 }
 0xcd6   :  { %v1348_v33 = vpop.eup %1347 }
 0xcd7   :  { %808 = vrot.lane.b32.xlu1 %v1348_v33, %s1382_s5 }
 0xcd8   :  { %v1350_v35 = vpop.eup %1349 }
 0xcd9   :  { %v802_v37 = vadd.f32 1.0, %v1350_v35 }
 0xcdb   :  { %1351 = vrcp.f32 %v802_v37 }
 0xce5   :  { %v1352_v38 = vpop.eup %1351 }
 0xce6   :  { %v806_v42 = vmul.f32 %v1352_v38, %v744_v21 }
 0xd49   :  { %v809_v40 = vpop.permute.xlu1 %808 }
 0xd4a   :  { %v811_v41 = vmul.f32 %v1352_v38, %v809_v40 }
 0xd4c   :  { %813 = vrot.lane.b32.xlu0 %v811_v41, %s1383_s7 }
 0xdbe   :  { %v814_v43 = vpop.permute.xlu0 %813 }
 0xdbf   :  { %v816_v44 = vadd.f32 %v814_v43, %v806_v42 }
 0xdc1   :  { %1353 = vtanh.f32 %v816_v44 }
 0xdcb   :  { %v1354_v45 = vpop.eup %1353 }
 0xdcc   :  { %819 = vrot.lane.b32.xlu1 %v1354_v45, %s1382_s5 }
 0xe3e   :  { %v820_v47 = vpop.permute.xlu1 %819 }
 0xe3f   :  { %v1650_v48 = vmul.f32 %v1352_v38, %v820_v47 }
 0xe41   :  { %v823_v49 = vpack.c.bf16 %v1650_v48, %v1650_v48 }
 0xe43   :  { %825 = vrot.lane.b32.xlu0 %v823_v49, %s1383_s7 }
 0xeb5   :  { %v826_v50 = vpop.permute.xlu0 %825 }
 0xeb6   :  { %1256 = vmatmul.mubr.msk.bf16.vlgmr.msra.gmra.mrb[16].mxu0 %vm54_vm1, %v826_v50 }
 0xeb7   :  { %1268 = vmatpush3.bf16.msra.mxu0 %v1539_v36  ;;  %1271 = vmatprep.mubr.msk.bf16.mxu0 %vm1380_vm0, %v1381_v8 }
 0xeb8   :  { %1269 = vmatprep.subr.bf16.mxu0 %v1381_v8 }
 0xebb   :  { %1270 = vmatpush3.bf16.msra.mxu0 %v1551_v39 }
 0xf89   :  { %v864_v51 = vpop.f32.mrb[16].mxu0 }
 0xf8a   :  { %v870_v52 = vadd.f32 %v864_v51, %v1580_v1  ;;  %v1257_v53 = vpop.f32.mrb[17].mxu0 }
 0xf8b   :  { %v867_v54 = vpop.f32.mrb[18].mxu0 }
 0xf8c   :  { %1355 = vtanh.f32 %v870_v52  ;;  %v1258_v55 = vpop.f32.mrb[19].mxu0  ;;  %v1102_v57 = vmul.f32 -1.442695, %v870_v52 }
 0xf8e   :  { %1357 = vpow2.f32 %v1102_v57 }
 0xf96   :  { %v1356_v56 = vpop.eup %1355 }
 0xf97   :  { %880 = vrot.lane.b32.xlu1 %v1356_v56, %s1382_s5 }
 0xf98   :  { %v1358_v36 = vpop.eup %1357 }
 0xf99   :  { %v874_v58 = vadd.f32 1.0, %v1358_v36 }
 0xf9b   :  { %1359 = vrcp.f32 %v874_v58 }
 0xfa5   :  { %v1360_v59 = vpop.eup %1359 }
 0xfa6   :  { %v878_v39 = vmul.f32 %v1360_v59, %v816_v44 }
0x1009   :  { %v881_v60 = vpop.permute.xlu1 %880 }
0x100a   :  { %v883_v8 = vmul.f32 %v1360_v59, %v881_v60 }
0x100c   :  { %885 = vrot.lane.b32.xlu0 %v883_v8, %s1383_s7 }
0x107e   :  { %v886_v61 = vpop.permute.xlu0 %885 }
0x107f   :  { %v888_v62 = vadd.f32 %v886_v61, %v878_v39 }
0x1081   :  { %1361 = vtanh.f32 %v888_v62 }
0x108b   :  { %v1362_v63 = vpop.eup %1361 }
0x108c   :  { %891 = vrot.lane.b32.xlu1 %v1362_v63, %s1382_s5 }
0x10fe   :  { %v892_v0 = vpop.permute.xlu1 %891 }
0x10ff   :  { %v894_v2 = vmul.f32 %v1360_v59, %v892_v0 }
0x1101   :  { %v895_v4 = vpack.c.bf16 %v894_v2, %v894_v2 }
0x1103   :  { %897 = vrot.lane.b32.xlu0 %v895_v4, %s1383_s7 }
0x1175   :  { %v898_v5 = vpop.permute.xlu0 %897 }
0x1176   :  { %1264 = vmatmul.mubr.msk.bf16.vlgmr.msra.gmra.mrb[16].mxu1 %vm54_vm1, %v898_v5 }
0x1249   :  { %v936_v6 = vpop.f32.mrb[16].mxu1 }
0x124a   :  { %v942_v7 = vadd.f32 %v936_v6, %v1580_v1  ;;  %v1265_v9 = vpop.f32.mrb[17].mxu1 }
0x124b   :  { %v939_v10 = vpop.f32.mrb[18].mxu1 }
0x124c   :  { %1363 = vtanh.f32 %v942_v7  ;;  %v1266_v11 = vpop.f32.mrb[19].mxu1  ;;  %v1104_v13 = vmul.f32 -1.442695, %v942_v7 }
0x124e   :  { %1365 = vpow2.f32 %v1104_v13 }
0x1256   :  { %v1364_v12 = vpop.eup %1363 }
0x1257   :  { %952 = vrot.lane.b32.xlu1 %v1364_v12, %s1382_s5 }
0x1258   :  { %v1366_v14 = vpop.eup %1365 }
0x1259   :  { %v946_v15 = vadd.f32 1.0, %v1366_v14 }
0x125b   :  { %1367 = vrcp.f32 %v946_v15 }
0x1265   :  { %v1368_v16 = vpop.eup %1367 }
0x1266   :  { %v950_v19 = vmul.f32 %v1368_v16, %v888_v62 }
0x12c9   :  { %v953_v17 = vpop.permute.xlu1 %952 }
0x12ca   :  { %v955_v18 = vmul.f32 %v1368_v16, %v953_v17 }
0x12cc   :  { %957 = vrot.lane.b32.xlu0 %v955_v18, %s1383_s7 }
0x133e   :  { %v958_v20 = vpop.permute.xlu0 %957 }
0x133f   :  { %v960_v21 = vadd.f32 %v958_v20, %v950_v19 }
0x1341   :  { %1369 = vtanh.f32 %v960_v21 }
0x134b   :  { %v1370_v22 = vpop.eup %1369 }
0x134c   :  { %963 = vrot.lane.b32.xlu1 %v1370_v22, %s1382_s5 }
0x13be   :  { %v964_v23 = vpop.permute.xlu1 %963 }
0x13bf   :  { %v966_v26 = vmul.f32 %v1368_v16, %v964_v23 }
0x13c1   :  { %v967_v27 = vpack.c.bf16 %v966_v26, %v966_v26 }
0x13c3   :  { %969 = vrot.lane.b32.xlu0 %v967_v27, %s1383_s7 }
0x1435   :  { %v970_v28 = vpop.permute.xlu0 %969 }
0x1436   :  { %1272 = vmatmul.mubr.msk.bf16.vlgmr.msra.gmra.mrb[20].mxu0 %vm54_vm1, %v970_v28 }
0x1509   :  { %v1008_v29 = vpop.f32.mrb[20].mxu0 }
0x150a   :  { %v1014_v30 = vadd.f32 %v1008_v29, %v1580_v1  ;;  %v1273_v31 = vpop.f32.mrb[21].mxu0 }
0x150b   :  { %v1011_v32 = vpop.f32.mrb[22].mxu0 }
0x150c   :  { %1371 = vtanh.f32 %v1014_v30  ;;  %v1274_v33 = vpop.f32.mrb[23].mxu0  ;;  %v1106_v35 = vmul.f32 -1.442695, %v1014_v30 }
0x150e   :  { %1373 = vpow2.f32 %v1106_v35 }
0x1516   :  { %v1372_v34 = vpop.eup %1371 }
0x1517   :  { %1024 = vrot.lane.b32.xlu1 %v1372_v34, %s1382_s5 }
0x1518   :  { %v1374_v37 = vpop.eup %1373 }
0x1519   :  { %v1018_v38 = vadd.f32 1.0, %v1374_v37 }
0x151b   :  { %1044 = vrot.lane.b32.xlu1 %v1603_v46, %s1382_s5  ;;  %1375 = vrcp.f32 %v1018_v38 }
0x151f   :  { %1056 = vrot.lane.b32.xlu1 %v894_v2, %s1382_s5 }
0x1525   :  { %v1376_v40 = vpop.eup %1375 }
0x1526   :  { %v1022_v46 = vmul.f32 %v1376_v40, %v960_v21 }
0x1589   :  { %v1025_v41 = vpop.permute.xlu1 %1024 }
0x158a   :  { %v1027_v1 = vmul.f32 %v1376_v40, %v1025_v41 }
0x158c   :  { %1029 = vrot.lane.b32.xlu0 %v1027_v1, %s1383_s7 }
0x158d   :  { %v1045_v47 = vpop.permute.xlu1 %1044 }
0x1590   :  { %1040 = vrot.lane.b32.xlu0 %v1587_v24, %s1383_s7 }
0x1591   :  { %v1057_v50 = vpop.permute.xlu1 %1056 }
0x1594   :  { %1052 = vrot.lane.b32.xlu0 %v1650_v48, %s1383_s7 }
0x1598   :  { %1048 = vrot.lane.b32.xlu0 %v1619_v3, %s1384_s9 }
0x15fe   :  { %v1030_v42 = vpop.permute.xlu0 %1029 }
0x15ff   :  { %v1032_v43 = vadd.f32 %v1030_v42, %v1022_v46 }
0x1601   :  { %1377 = vtanh.f32 %v1032_v43 }
0x1602   :  { %v1041_v45 = vpop.permute.xlu0 %1040 }
0x1603   :  { %v1063_v48 = vsel %vm54_vm1, %v1041_v45, %v1045_v47 }
0x1606   :  { %v1053_v49 = vpop.permute.xlu0 %1052 }
0x1607   :  { %v1068_v3 = vsel %vm54_vm1, %v1053_v49, %v1057_v50 }
0x160a   :  { %v1049_v24 = vpop.permute.xlu0 %1048 }
0x160b   :  { %v1378_v44 = vpop.eup %1377  ;;  %v1065_v52 = vsel %vm1064_vm4, %v1063_v48, %v1049_v24 }
0x160c   :  { %1035 = vrot.lane.b32.xlu1 %v1378_v44, %s1382_s5  ;;  %v1067_v56 = vsel %vm1066_vm5, %v1065_v52, %v1635_v25 }
0x1610   :  { %1060 = vrot.lane.b32.xlu1 %v966_v26, %s1384_s9 }
0x167e   :  { %v1036_v51 = vpop.permute.xlu1 %1035 }
0x167f   :  { %v1038_v53 = vmul.f32 %v1376_v40, %v1036_v51 }
0x1682   :  { %v1061_v54 = vpop.permute.xlu1 %1060 }
0x1683   :  { %v1069_v55 = vsel %vm1064_vm4, %v1068_v3, %v1061_v54 }
0x1684   :  { %v1070_v57 = vsel %vm1066_vm5, %v1069_v55, %v1038_v53 }
0x1685   :  { %v1073_v36 = vcombine.low %v1067_v56, %v1070_v57 }
0x1687   :  { %1075 = vst [vmem:[%s1701_s10] sm:$0xff] %v1073_v36 }

</bundles_post_ra>
